<compile_context>
chip_gen: v7x
topology: tpu7x:2x2x1
jax: 0.10.0
libtpu: 0.0.40
codegen_flags: <defaults>
</compile_context>

<pallas_src>
import jax
import jax.numpy as jnp
from jax.experimental import pallas as pl
from jax.experimental.pallas import tpu as pltpu

HEIGHT = 26
WIDTH = 26
NUM_CLASSES = 5

IN_DIM = HEIGHT * WIDTH          # 676
H1_DIM = 300
H2_DIM = 100

# Hardware-friendly padded sizes (multiples of 128; 768/512 also multiples of
# 256 for the v6e/v7x 256-wide MXU).
IN_PAD = 768
H1_PAD = 512
H2_PAD = 128
OUT_PAD = 128

DROP_P = 0.5                     # F.dropout default, training=True


def _round_up(n, m):
    return (n + m - 1) // m * m


def mlp_kernel(x_ref, bits_ref, w1_ref, b1_ref, w2_ref, b2_ref, w3_ref, b3_ref,
               o_ref):
    # ---- layer 1: linear + relu (bf16 operands, f32 MXU accumulation) ----
    h1 = jnp.dot(x_ref[...].astype(jnp.bfloat16), w1_ref[...],
                 preferred_element_type=jnp.float32)
    h1 = jnp.maximum(h1 + b1_ref[...], 0.0)

    # ---- dropout(p=0.5): keep w.p. 0.5, scale by 1/(1-p)=2 (== h1 + h1) ----
    keep = bits_ref[...] < jnp.uint32(2**31)
    h1 = jnp.where(keep, h1 + h1, 0.0)

    # ---- layer 2: linear + relu ----
    h2 = jnp.dot(h1.astype(jnp.bfloat16), w2_ref[...],
                 preferred_element_type=jnp.float32)
    h2 = jnp.maximum(h2 + b2_ref[...], 0.0)

    # ---- layer 3: linear + relu (lane-dense 128-wide padded output) ----
    h3 = jnp.dot(h2.astype(jnp.bfloat16), w3_ref[...],
                 preferred_element_type=jnp.float32)
    o_ref[...] = jnp.maximum(h3 + b3_ref[...], 0.0).astype(o_ref.dtype)


def feed_forward_nn(x, params, dropout_key):
    """x: (B, 676) f32.  Returns (B, NUM_CLASSES) f32 (training-mode forward)."""
    B = x.shape[0]

    # Batch tiling: single block for small B, 256-row streamed tiles for big B.
    if B <= 256:
        tile_b = _round_up(B, 8)
        b_pad = tile_b
    else:
        tile_b = 256
        b_pad = _round_up(B, tile_b)

    # Zero-pad batch and feature dims (exact: padded weight rows are zero).
    x_p = jnp.zeros((b_pad, IN_PAD), jnp.float32).at[:B, :IN_DIM].set(x)

    # Dropout bits for the whole (padded) batch, streamed per batch tile.
    bits = jax.random.bits(dropout_key, (b_pad, H1_PAD), dtype=jnp.uint32)

    grid = (b_pad // tile_b,)

    def batch_spec(cols):
        return pl.BlockSpec((tile_b, cols), lambda i: (i, 0))

    def resident_spec(rows, cols):
        return pl.BlockSpec((rows, cols), lambda i: (0, 0))

    out_padded = pl.pallas_call(
        mlp_kernel,
        out_shape=jax.ShapeDtypeStruct((b_pad, OUT_PAD), jnp.float32),
        grid=grid,
        in_specs=[
            batch_spec(IN_PAD),                 # x tile (streamed)
            batch_spec(H1_PAD),                 # dropout bits tile (streamed)
            resident_spec(IN_PAD, H1_PAD),      # w1t (bf16, VMEM-resident)
            resident_spec(1, H1_PAD),           # b1
            resident_spec(H1_PAD, H2_PAD),      # w2t
            resident_spec(1, H2_PAD),           # b2
            resident_spec(H2_PAD, OUT_PAD),     # w3t
            resident_spec(1, OUT_PAD),          # b3
        ],
        out_specs=batch_spec(OUT_PAD),
        compiler_params=pltpu.CompilerParams(
            dimension_semantics=("parallel",)),  # v7x: shard batch over 2 TCs
    )(x_p, bits, params["w1t"], params["b1"], params["w2t"], params["b2"],
      params["w3t"], params["b3"])

    return out_padded[:B, :NUM_CLASSES]


def init_params(key):
    """torch.nn.Linear-style init (uniform +/- 1/sqrt(fan_in)) on the true
    676/300/100/5 shapes, zero-padded to the hardware-friendly sizes.
    Weights pre-transposed to (in, out) and stored bf16; biases stay f32."""
    k1, k2, k3, k4, k5, k6 = jax.random.split(key, 6)

    def uniform(k, shape, fan_in):
        bound = 1.0 / float(fan_in) ** 0.5
        return jax.random.uniform(k, shape, jnp.float32, -bound, bound)

    def pad_w(w, rows, cols):
        return (jnp.zeros((rows, cols), jnp.float32)
                .at[:w.shape[0], :w.shape[1]].set(w).astype(jnp.bfloat16))

    def pad_b(b, cols):
        return jnp.zeros((1, cols), jnp.float32).at[0, :b.shape[0]].set(b)

    w1 = uniform(k1, (IN_DIM, H1_DIM), IN_DIM)
    b1 = uniform(k2, (H1_DIM,), IN_DIM)
    w2 = uniform(k3, (H1_DIM, H2_DIM), H1_DIM)
    b2 = uniform(k4, (H2_DIM,), H1_DIM)
    w3 = uniform(k5, (H2_DIM, NUM_CLASSES), H2_DIM)
    b3 = uniform(k6, (NUM_CLASSES,), H2_DIM)

    return {
        "w1t": pad_w(w1, IN_PAD, H1_PAD), "b1": pad_b(b1, H1_PAD),
        "w2t": pad_w(w2, H1_PAD, H2_PAD), "b2": pad_b(b2, H2_PAD),
        "w3t": pad_w(w3, H2_PAD, OUT_PAD), "b3": pad_b(b3, OUT_PAD),
    }


if __name__ == "__main__":
    key = jax.random.PRNGKey(0)
    pkey, xkey, dkey = jax.random.split(key, 3)

    params = init_params(pkey)

    B = 8
    x = jax.random.normal(xkey, (B, IN_DIM), dtype=jnp.float32)

    y = feed_forward_nn(x, params, dkey)
    y = jax.block_until_ready(y)

    assert y.shape == (B, NUM_CLASSES), y.shape
    assert y.dtype == jnp.float32
    assert bool(jnp.all(jnp.isfinite(y)))
    assert bool(jnp.all(y >= 0.0))      # final relu
    print("KERNEL_OK")
</pallas_src>

<mosaic_0001>
module attributes {stable_mosaic.version = 11 : i64} {
  func.func @mlp_kernel(%arg0: i32, %arg1: memref<8x768xf32, #tpu.memory_space<vmem>>, %arg2: memref<8x512xi32, #tpu.memory_space<vmem>>, %arg3: memref<768x512xbf16, #tpu.memory_space<vmem>>, %arg4: memref<1x512xf32, #tpu.memory_space<vmem>>, %arg5: memref<512x128xbf16, #tpu.memory_space<vmem>>, %arg6: memref<1x128xf32, #tpu.memory_space<vmem>>, %arg7: memref<128x128xbf16, #tpu.memory_space<vmem>>, %arg8: memref<1x128xf32, #tpu.memory_space<vmem>>, %arg9: memref<8x128xf32, #tpu.memory_space<vmem>>) attributes {dimension_semantics = [#tpu.dimension_semantics<parallel>], iteration_bounds = array<i64: 1>, scalar_prefetch = 0 : i64, scratch_operands = 0 : i64, tpu.core_type = #tpu.core_type<tc>, window_params = [{transform_indices = @transform_0, window_bounds = array<i64: 8, 768>}, {transform_indices = @transform_1, window_bounds = array<i64: 8, 512>}, {pipeline_mode = #tpu.pipeline_mode<synchronous>, transform_indices = @transform_2, window_bounds = array<i64: 768, 512>}, {pipeline_mode = #tpu.pipeline_mode<synchronous>, transform_indices = @transform_3, window_bounds = array<i64: 1, 512>}, {pipeline_mode = #tpu.pipeline_mode<synchronous>, transform_indices = @transform_4, window_bounds = array<i64: 512, 128>}, {pipeline_mode = #tpu.pipeline_mode<synchronous>, transform_indices = @transform_5, window_bounds = array<i64: 1, 128>}, {pipeline_mode = #tpu.pipeline_mode<synchronous>, transform_indices = @transform_6, window_bounds = array<i64: 128, 128>}, {pipeline_mode = #tpu.pipeline_mode<synchronous>, transform_indices = @transform_7, window_bounds = array<i64: 1, 128>}, {transform_indices = @transform_8, window_bounds = array<i64: 8, 128>}]} {
    %c0 = arith.constant 0 : index
    %c0_0 = arith.constant 0 : index
    %0 = vector.load %arg1[%c0, %c0_0] : memref<8x768xf32, #tpu.memory_space<vmem>>, vector<8x768xf32>
    %1 = arith.truncf %0 : vector<8x768xf32> to vector<8x768xbf16>
    %c0_1 = arith.constant 0 : index
    %c0_2 = arith.constant 0 : index
    %2 = vector.load %arg3[%c0_1, %c0_2] : memref<768x512xbf16, #tpu.memory_space<vmem>>, vector<768x512xbf16>
    %cst = arith.constant dense<0.000000e+00> : vector<8x512xf32>
    %3 = tpu.matmul %1, %2, %cst {dimension_numbers = #tpu.dot_dimension_numbers<[1], [0], [0], [1], [0, 0, 1, 1], [], []>} : vector<8x768xbf16>, vector<768x512xbf16>, vector<8x512xf32> -> vector<8x512xf32>
    %c0_3 = arith.constant 0 : index
    %c0_4 = arith.constant 0 : index
    %4 = vector.load %arg4[%c0_3, %c0_4] : memref<1x512xf32, #tpu.memory_space<vmem>>, vector<1x512xf32>
    %5 = vector.broadcast %4 : vector<1x512xf32> to vector<8x512xf32>
    %6 = arith.addf %3, %5 : vector<8x512xf32>
    %cst_5 = arith.constant 0.000000e+00 : f32
    %7 = vector.broadcast %cst_5 : f32 to vector<8x512xf32>
    %8 = arith.maximumf %6, %7 : vector<8x512xf32>
    %c0_6 = arith.constant 0 : index
    %c0_7 = arith.constant 0 : index
    %9 = vector.load %arg2[%c0_6, %c0_7] : memref<8x512xi32, #tpu.memory_space<vmem>>, vector<8x512xi32>
    %c-2147483648_i32 = arith.constant -2147483648 : i32
    %10 = vector.broadcast %c-2147483648_i32 : i32 to vector<8x512xi32>
    %11 = arith.cmpi ult, %9, %10 : vector<8x512xi32>
    %12 = arith.addf %8, %8 : vector<8x512xf32>
    %cst_8 = arith.constant 0.000000e+00 : f32
    %13 = vector.broadcast %cst_8 : f32 to vector<8x512xf32>
    %14 = arith.select %11, %12, %13 : vector<8x512xi1>, vector<8x512xf32>
    %15 = arith.truncf %14 : vector<8x512xf32> to vector<8x512xbf16>
    %c0_9 = arith.constant 0 : index
    %c0_10 = arith.constant 0 : index
    %16 = vector.load %arg5[%c0_9, %c0_10] : memref<512x128xbf16, #tpu.memory_space<vmem>>, vector<512x128xbf16>
    %cst_11 = arith.constant dense<0.000000e+00> : vector<8x128xf32>
    %17 = tpu.matmul %15, %16, %cst_11 {dimension_numbers = #tpu.dot_dimension_numbers<[1], [0], [0], [1], [0, 0, 1, 1], [], []>} : vector<8x512xbf16>, vector<512x128xbf16>, vector<8x128xf32> -> vector<8x128xf32>
    %c0_12 = arith.constant 0 : index
    %c0_13 = arith.constant 0 : index
    %18 = vector.load %arg6[%c0_12, %c0_13] : memref<1x128xf32, #tpu.memory_space<vmem>>, vector<1x128xf32>
    %19 = vector.broadcast %18 : vector<1x128xf32> to vector<8x128xf32>
    %20 = arith.addf %17, %19 : vector<8x128xf32>
    %cst_14 = arith.constant 0.000000e+00 : f32
    %21 = vector.broadcast %cst_14 : f32 to vector<8x128xf32>
    %22 = arith.maximumf %20, %21 : vector<8x128xf32>
    %23 = arith.truncf %22 : vector<8x128xf32> to vector<8x128xbf16>
    %c0_15 = arith.constant 0 : index
    %c0_16 = arith.constant 0 : index
    %24 = vector.load %arg7[%c0_15, %c0_16] : memref<128x128xbf16, #tpu.memory_space<vmem>>, vector<128x128xbf16>
    %cst_17 = arith.constant dense<0.000000e+00> : vector<8x128xf32>
    %25 = tpu.matmul %23, %24, %cst_17 {dimension_numbers = #tpu.dot_dimension_numbers<[1], [0], [0], [1], [0, 0, 1, 1], [], []>} : vector<8x128xbf16>, vector<128x128xbf16>, vector<8x128xf32> -> vector<8x128xf32>
    %c0_18 = arith.constant 0 : index
    %c0_19 = arith.constant 0 : index
    %26 = vector.load %arg8[%c0_18, %c0_19] : memref<1x128xf32, #tpu.memory_space<vmem>>, vector<1x128xf32>
    %27 = vector.broadcast %26 : vector<1x128xf32> to vector<8x128xf32>
    %28 = arith.addf %25, %27 : vector<8x128xf32>
    %cst_20 = arith.constant 0.000000e+00 : f32
    %29 = vector.broadcast %cst_20 : f32 to vector<8x128xf32>
    %30 = arith.maximumf %28, %29 : vector<8x128xf32>
    %c0_21 = arith.constant 0 : index
    %c0_22 = arith.constant 0 : index
    %31 = vector.load %arg9[%c0_21, %c0_22] : memref<8x128xf32, #tpu.memory_space<vmem>>, vector<8x128xf32>
    tpu.vector_store %arg9[%c0_21, %c0_22], %30 {strides = array<i32>} : memref<8x128xf32, #tpu.memory_space<vmem>>, vector<8x128xf32>,
    return
  }
  func.func @transform_0(%arg0: i32) -> (i32, i32) {
    %c0_i32 = arith.constant 0 : i32
    %c0_i32_0 = arith.constant 0 : i32
    return %arg0, %c0_i32 : i32, i32
  }
  func.func @transform_1(%arg0: i32) -> (i32, i32) {
    %c0_i32 = arith.constant 0 : i32
    %c0_i32_0 = arith.constant 0 : i32
    return %arg0, %c0_i32 : i32, i32
  }
  func.func @transform_2(%arg0: i32) -> (i32, i32) {
    %c0_i32 = arith.constant 0 : i32
    %c0_i32_0 = arith.constant 0 : i32
    %c0_i32_1 = arith.constant 0 : i32
    return %c0_i32, %c0_i32_0 : i32, i32
  }
  func.func @transform_3(%arg0: i32) -> (i32, i32) {
    %c0_i32 = arith.constant 0 : i32
    %c0_i32_0 = arith.constant 0 : i32
    %c0_i32_1 = arith.constant 0 : i32
    return %c0_i32, %c0_i32_0 : i32, i32
  }
  func.func @transform_4(%arg0: i32) -> (i32, i32) {
    %c0_i32 = arith.constant 0 : i32
    %c0_i32_0 = arith.constant 0 : i32
    %c0_i32_1 = arith.constant 0 : i32
    return %c0_i32, %c0_i32_0 : i32, i32
  }
  func.func @transform_5(%arg0: i32) -> (i32, i32) {
    %c0_i32 = arith.constant 0 : i32
    %c0_i32_0 = arith.constant 0 : i32
    %c0_i32_1 = arith.constant 0 : i32
    return %c0_i32, %c0_i32_0 : i32, i32
  }
  func.func @transform_6(%arg0: i32) -> (i32, i32) {
    %c0_i32 = arith.constant 0 : i32
    %c0_i32_0 = arith.constant 0 : i32
    %c0_i32_1 = arith.constant 0 : i32
    return %c0_i32, %c0_i32_0 : i32, i32
  }
  func.func @transform_7(%arg0: i32) -> (i32, i32) {
    %c0_i32 = arith.constant 0 : i32
    %c0_i32_0 = arith.constant 0 : i32
    %c0_i32_1 = arith.constant 0 : i32
    return %c0_i32, %c0_i32_0 : i32, i32
  }
  func.func @transform_8(%arg0: i32) -> (i32, i32) {
    %c0_i32 = arith.constant 0 : i32
    %c0_i32_0 = arith.constant 0 : i32
    return %arg0, %c0_i32 : i32, i32
  }
}

</mosaic_0001>

<bundles_post_ra>
// kernel: tpu_custom_call.1
= control target key start
LH: loop header
LB: loop body
LE: loop exit
PB: predicated region body
PF: predicated region fallthrough
CT: control target
= control target key end

     0   :  { %13 = vsyncpa [#allocation3], 0  ;;  %s3012_s0 = inlined_call_operand.hbm [shape: f32[8,768], index: 0, kind: input, shape index: {}]   ;;  %s3013_s1 = inlined_call_operand.hbm [shape: u32[8,512], index: 1, kind: input, shape index: {}]   ;;  %s3014_s2 = inlined_call_operand.hbm [shape: bf16[768,512], index: 2, kind: input, shape index: {}]   ;;  %s3015_s3 = inlined_call_operand.vmem [shape: f32[1,512], index: 3, kind: input, shape index: {}]   ;;  %s3016_s4 = inlined_call_operand.hbm [shape: bf16[512,128], index: 4, kind: input, shape index: {}]   ;;  %s3017_s5 = inlined_call_operand.vmem [shape: f32[1,128], index: 5, kind: input, shape index: {}]   ;;  %s3018_s6 = inlined_call_operand.hbm [shape: bf16[128,128], index: 6, kind: input, shape index: {}]   ;;  %s3019_s7 = inlined_call_operand.vmem [shape: f32[1,128], index: 7, kind: input, shape index: {}]   ;;  %s3020_s8 = inlined_call_operand.hbm [shape: f32[8,128], index: 8, kind: output, shape index: {}]  }
   0x1   :  { %14 = vsyncpa [#allocation6], 0 }
   0x2   :  { %15 = vsyncpa [#allocation9], 0 }
   0x3   :  { %16 = vsyncpa [#allocation4], 0  ;;  %s2845_s27 = smov [#allocation5]   ;;  %s2846_s29 = smov [#allocation8]  }
   0x4   :  { %s33_s28 = sshll.u32 %s2845_s27, 4  ;;  %s56_s30 = sshll.u32 %s2846_s29, 4  ;;  %s34_s28 = int_to_ptr.vmem [resolvable:$true] %s33_s28  ;;  %s2902_s30 = int_to_ptr.vmem [resolvable:$true] %s56_s30 }
   0x5   :  { %s2705_s11 = scalar_lea.hbm %s3013_s1, 512 }
   0x6   :  { %p2706_p0 = scmp.ne.s32.totalorder %s3013_s1, %s2705_s11  ;;  %p2709_p1 = scmp.lt.u32.totalorder %s2705_s11, %s3013_s1 }
   0x8   :  { %p2711_p2 = pnand %p2709_p1, %p2706_p0 }
   0xa   :  { %2714 = shalt.err (!%p2711_p2)
}
   0xb   :  { %s2715_s16 = scalar_lea.vmem %s34_s28, 512  ;;  %p2720_p4 = scmp.lt.s32.totalorder %s34_s28, %s34_s28 }
   0xc   :  { %p2716_p3 = scmp.ne.s32.totalorder %s34_s28, %s2715_s16  ;;  %p2721_p5 = scmp.lt.s32.totalorder %s2715_s16, %s2715_s16 }
   0xe   :  { %p2722_p6 = por %p2721_p5, %p2720_p4 }
  0x10   :  { %p2723_p7 = pnand %p2722_p6, %p2716_p3 }
  0x12   :  { %2726 = shalt.err (!%p2723_p7)
}
  0x13   :  { %36 = dma.hbm_to_vmem [thread:$0]  %s3013_s1, 512, %s34_s28, [#allocation6]  }
  0x14   :  { %s2727_s21 = scalar_lea.hbm %s3016_s4, 4096 }
  0x15   :  { %p2728_p8 = scmp.ne.s32.totalorder %s3016_s4, %s2727_s21  ;;  %p2731_p9 = scmp.lt.u32.totalorder %s2727_s21, %s3016_s4 }
  0x17   :  { %p2733_p10 = pnand %p2731_p9, %p2728_p8 }
  0x19   :  { %2736 = shalt.err (!%p2733_p10)
}
  0x1a   :  { %s2737_s26 = scalar_lea.vmem %s2902_s30, 4096  ;;  %p2742_p12 = scmp.lt.s32.totalorder %s2902_s30, %s2902_s30 }
  0x1b   :  { %p2738_p11 = scmp.ne.s32.totalorder %s2902_s30, %s2737_s26  ;;  %p2743_p13 = scmp.lt.s32.totalorder %s2737_s26, %s2737_s26 }
  0x1d   :  { %p2744_p0 = por %p2743_p13, %p2742_p12 }
  0x1f   :  { %p2745_p1 = pnand %p2744_p0, %p2738_p11 }
  0x21   :  { %2748 = shalt.err (!%p2745_p1)
}
  0x22   :  { %s2847_s1 = smov 64   ;;  %s2848_s27 = smov 4  }
  0x23   :  { %62 = dma.hbm_to_vmem [thread:$0]  %s3016_s4, 4096, %s2902_s30, [#allocation9], %s2847_s1, %s2847_s1, %s2848_s27  }
  0x24   :  { %s2849_s9 = smov [#allocation2]   ;;  %s2850_s11 = smov [#allocation7]  }
  0x25   :  { %s23_s10 = sshll.u32 %s2849_s9, 4  ;;  %s42_s12 = sshll.u32 %s2850_s11, 4  ;;  %s24_s10 = int_to_ptr.vmem [resolvable:$true] %s23_s10  ;;  %s2936_s12 = int_to_ptr.vmem [resolvable:$true] %s42_s12 }
  0x26   :  { %s2749_s15 = scalar_lea.hbm %s3012_s0, 768 }
  0x27   :  { %p2750_p2 = scmp.ne.s32.totalorder %s3012_s0, %s2749_s15  ;;  %p2753_p3 = scmp.lt.u32.totalorder %s2749_s15, %s3012_s0 }
  0x29   :  { %p2755_p4 = pnand %p2753_p3, %p2750_p2 }
  0x2b   :  { %2758 = shalt.err (!%p2755_p4)
}
  0x2c   :  { %s2759_s4 = scalar_lea.vmem %s24_s10, 768  ;;  %p2764_p6 = scmp.lt.s32.totalorder %s24_s10, %s24_s10 }
  0x2d   :  { %p2760_p5 = scmp.ne.s32.totalorder %s24_s10, %s2759_s4  ;;  %p2765_p7 = scmp.lt.s32.totalorder %s2759_s4, %s2759_s4 }
  0x2f   :  { %p2766_p8 = por %p2765_p7, %p2764_p6 }
  0x31   :  { %p2767_p9 = pnand %p2766_p8, %p2760_p5 }
  0x33   :  { %2770 = shalt.err (!%p2767_p9)
}
  0x34   :  { %26 = dma.hbm_to_vmem [thread:$0]  %s3012_s0, 768, %s24_s10, [#allocation3]  }
  0x35   :  { %s2771_s23 = scalar_lea.hbm %s3014_s2, 24576 }
  0x36   :  { %p2772_p10 = scmp.ne.s32.totalorder %s3014_s2, %s2771_s23  ;;  %p2775_p11 = scmp.lt.u32.totalorder %s2771_s23, %s3014_s2 }
  0x38   :  { %p2777_p12 = pnand %p2775_p11, %p2772_p10 }
  0x3a   :  { %2780 = shalt.err (!%p2777_p12)
}
  0x3b   :  { %s2781_s29 = scalar_lea.vmem %s2936_s12, 24576  ;;  %p2786_p0 = scmp.lt.s32.totalorder %s2936_s12, %s2936_s12 }
  0x3c   :  { %p2782_p13 = scmp.ne.s32.totalorder %s2936_s12, %s2781_s29  ;;  %p2787_p1 = scmp.lt.s32.totalorder %s2781_s29, %s2781_s29 }
  0x3e   :  { %p2788_p2 = por %p2787_p1, %p2786_p0 }
  0x40   :  { %p2789_p3 = pnand %p2788_p2, %p2782_p13 }
  0x42   :  { %2792 = shalt.err (!%p2789_p3)
}
  0x43   :  { %s2851_s0 = smov 256   ;;  %s2852_s9 = smov 16  }
  0x44   :  { %48 = dma.hbm_to_vmem [thread:$0]  %s3014_s2, 24576, %s2936_s12, [#allocation6], %s2851_s0, %s2851_s0, %s2852_s9  }
  0x45   :  { %s2853_s13 = smov [#allocation10]   ;;  %s2793_s17 = scalar_lea.hbm %s3018_s6, 1024 }
  0x46   :  { %s70_s14 = sshll.u32 %s2853_s13, 4  ;;  %p2794_p4 = scmp.ne.s32.totalorder %s3018_s6, %s2793_s17  ;;  %s71_s14 = int_to_ptr.vmem [resolvable:$true] %s70_s14 }
  0x47   :  { %p2797_p5 = scmp.lt.u32.totalorder %s2793_s17, %s3018_s6 }
  0x49   :  { %p2799_p6 = pnand %p2797_p5, %p2794_p4 }
  0x4b   :  { %2802 = shalt.err (!%p2799_p6)
}
  0x4c   :  { %s2803_s20 = scalar_lea.vmem %s71_s14, 1024  ;;  %p2808_p8 = scmp.lt.s32.totalorder %s71_s14, %s71_s14 }
  0x4d   :  { %p2804_p7 = scmp.ne.s32.totalorder %s71_s14, %s2803_s20  ;;  %p2809_p9 = scmp.lt.s32.totalorder %s2803_s20, %s2803_s20 }
  0x4f   :  { %p2810_p10 = por %p2809_p9, %p2808_p8 }
  0x51   :  { %p2811_p11 = pnand %p2810_p10, %p2804_p7 }
  0x53   :  { %2814 = shalt.err (!%p2811_p11)
}
  0x54   :  { %76 = dma.hbm_to_vmem [thread:$0]  %s3018_s6, 1024, %s71_s14, [#allocation9], %s2847_s1, %s2847_s1, %s2848_s27  }
  0x55   :  { %2837 = dma.done.wait [#allocation3], 768  }
  0x56   :  { %2838 = vsyncadd [#allocation3], 4294966528 }
  0x57   :  { %2839 = dma.done.wait [#allocation6], 25088  }
  0x58   :  { %2840 = vsyncadd [#allocation6], 4294942208 }
  0x59   :  { %2841 = dma.done.wait [#allocation9], 5120  }
  0x5a   :  { %2842 = vsyncadd [#allocation9], 4294962176  ;;  %v2377_v0 = vld [vmem:[#allocation7 + $0x4] ss:$16 sps:$4 sm:$0xff]   ;;  %v2379_v1 = vld [vmem:[#allocation7 + $0xc] ss:$16 sps:$4 sm:$0xff]  }
  0x5b   :  { %1281 = vmatprep.subr.bf16.mxu0 %v2377_v0  ;;  %v2381_v2 = vld [vmem:[#allocation7] ss:$16 sps:$4 sm:$0xff]   ;;  %v2382_v3 = vld [vmem:[#allocation7 + $0x8] ss:$16 sps:$4 sm:$0xff]   ;;  %1404 = vmatprep.subr.bf16.mxu1 %v2379_v1  ;;  %v2383_v4 = vld [vmem:[#allocation7 + $0x24] ss:$16 sps:$4 sm:$0xff]  }
  0x5c   :  { %1282 = vmatpush1.bf16.msra.mxu0 %v2381_v2  ;;  %1405 = vmatpush1.bf16.msra.mxu1 %v2382_v3  ;;  %v2385_v5 = vld [vmem:[#allocation7 + $0x2c] ss:$16 sps:$4 sm:$0xff]   ;;  %v2387_v6 = vld [vmem:[#allocation7 + $0x20] ss:$16 sps:$4 sm:$0xff]   ;;  %v2388_v7 = vld [vmem:[#allocation7 + $0x28] ss:$16 sps:$4 sm:$0xff]  }
  0x5d   :  { %1283 = vmatprep.subr.bf16.mxu0 %v2383_v4  ;;  %1406 = vmatprep.subr.bf16.mxu1 %v2385_v5  ;;  %v2389_v8 = vld [vmem:[#allocation7 + $0x44] ss:$16 sps:$4 sm:$0xff]   ;;  %v2391_v9 = vld [vmem:[#allocation7 + $0x4c] ss:$16 sps:$4 sm:$0xff]   ;;  %v2393_v10 = vld [vmem:[#allocation7 + $0x40] ss:$16 sps:$4 sm:$0xff]  }
  0x5e   :  { %v2394_v11 = vld [vmem:[#allocation7 + $0x48] ss:$16 sps:$4 sm:$0xff]   ;;  %v2395_v12 = vld [vmem:[#allocation7 + $0x64] ss:$16 sps:$4 sm:$0xff]   ;;  %v2397_v13 = vld [vmem:[#allocation7 + $0x6c] ss:$16 sps:$4 sm:$0xff]  }
  0x5f   :  { %v2399_v14 = vld [vmem:[#allocation7 + $0x60] ss:$16 sps:$4 sm:$0xff]   ;;  %v2400_v15 = vld [vmem:[#allocation7 + $0x68] ss:$16 sps:$4 sm:$0xff]   ;;  %v2401_v16 = vld [vmem:[#allocation7 + $0x84] ss:$16 sps:$4 sm:$0xff]  }
  0x60   :  { %1284 = vmatpush1.bf16.msra.mxu0 %v2387_v6  ;;  %1407 = vmatpush1.bf16.msra.mxu1 %v2388_v7  ;;  %v2403_v17 = vld [vmem:[#allocation7 + $0x8c] ss:$16 sps:$4 sm:$0xff]   ;;  %v2405_v18 = vld [vmem:[#allocation7 + $0x80] ss:$16 sps:$4 sm:$0xff]   ;;  %v2406_v19 = vld [vmem:[#allocation7 + $0x88] ss:$16 sps:$4 sm:$0xff]  }
  0x61   :  { %1285 = vmatprep.subr.bf16.mxu0 %v2389_v8  ;;  %1408 = vmatprep.subr.bf16.mxu1 %v2391_v9  ;;  %v2407_v20 = vld [vmem:[#allocation7 + $0xa4] ss:$16 sps:$4 sm:$0xff]   ;;  %v2409_v21 = vld [vmem:[#allocation7 + $0xac] ss:$16 sps:$4 sm:$0xff]   ;;  %v2411_v22 = vld [vmem:[#allocation7 + $0xa0] ss:$16 sps:$4 sm:$0xff]  }
  0x62   :  { %v2412_v23 = vld [vmem:[#allocation7 + $0xa8] ss:$16 sps:$4 sm:$0xff]   ;;  %v2413_v24 = vld [vmem:[#allocation7 + $0xc4] ss:$16 sps:$4 sm:$0xff]   ;;  %v2415_v25 = vld [vmem:[#allocation7 + $0xcc] ss:$16 sps:$4 sm:$0xff]  }
  0x63   :  { %v2417_v26 = vld [vmem:[#allocation7 + $0xc0] ss:$16 sps:$4 sm:$0xff]   ;;  %v2418_v27 = vld [vmem:[#allocation7 + $0xc8] ss:$16 sps:$4 sm:$0xff]   ;;  %v2419_v28 = vld [vmem:[#allocation7 + $0xe4] ss:$16 sps:$4 sm:$0xff]  }
  0x64   :  { %1286 = vmatpush1.bf16.msra.mxu0 %v2393_v10  ;;  %1409 = vmatpush1.bf16.msra.mxu1 %v2394_v11  ;;  %v2421_v29 = vld [vmem:[#allocation7 + $0xec] ss:$16 sps:$4 sm:$0xff]   ;;  %v2423_v30 = vld [vmem:[#allocation7 + $0xe0] ss:$16 sps:$4 sm:$0xff]   ;;  %v2424_v31 = vld [vmem:[#allocation7 + $0xe8] ss:$16 sps:$4 sm:$0xff]  }
  0x65   :  { %1287 = vmatprep.subr.bf16.mxu0 %v2395_v12  ;;  %1410 = vmatprep.subr.bf16.mxu1 %v2397_v13  ;;  %v2425_v32 = vld [vmem:[#allocation7 + $0x104] ss:$16 sps:$4 sm:$0xff]   ;;  %v2427_v33 = vld [vmem:[#allocation7 + $0x10c] ss:$16 sps:$4 sm:$0xff]   ;;  %v2429_v34 = vld [vmem:[#allocation7 + $0x100] ss:$16 sps:$4 sm:$0xff]  }
  0x66   :  { %v2430_v35 = vld [vmem:[#allocation7 + $0x108] ss:$16 sps:$4 sm:$0xff]   ;;  %v2431_v36 = vld [vmem:[#allocation7 + $0x124] ss:$16 sps:$4 sm:$0xff]   ;;  %v2433_v37 = vld [vmem:[#allocation7 + $0x12c] ss:$16 sps:$4 sm:$0xff]  }
  0x67   :  { %v2435_v38 = vld [vmem:[#allocation7 + $0x120] ss:$16 sps:$4 sm:$0xff]   ;;  %v2436_v39 = vld [vmem:[#allocation7 + $0x128] ss:$16 sps:$4 sm:$0xff]   ;;  %v2437_v40 = vld [vmem:[#allocation7 + $0x144] ss:$16 sps:$4 sm:$0xff]  }
  0x68   :  { %1288 = vmatpush1.bf16.msra.mxu0 %v2399_v14  ;;  %1411 = vmatpush1.bf16.msra.mxu1 %v2400_v15  ;;  %v2439_v41 = vld [vmem:[#allocation7 + $0x14c] ss:$16 sps:$4 sm:$0xff]   ;;  %v2441_v42 = vld [vmem:[#allocation7 + $0x140] ss:$16 sps:$4 sm:$0xff]   ;;  %v2442_v43 = vld [vmem:[#allocation7 + $0x148] ss:$16 sps:$4 sm:$0xff]  }
  0x69   :  { %1289 = vmatprep.subr.bf16.mxu0 %v2401_v16  ;;  %1412 = vmatprep.subr.bf16.mxu1 %v2403_v17  ;;  %v2443_v44 = vld [vmem:[#allocation7 + $0x164] ss:$16 sps:$4 sm:$0xff]   ;;  %v2445_v45 = vld [vmem:[#allocation7 + $0x16c] ss:$16 sps:$4 sm:$0xff]   ;;  %v2447_v47 = vld [vmem:[#allocation7 + $0x160] ss:$16 sps:$4 sm:$0xff]  }
  0x6a   :  { %v96_v46 = vld [vmem:[#allocation2 + $0x8] sm:$0xff]  ;;  %v2449_v50 = vld [vmem:[#allocation7 + $0x184] ss:$16 sps:$4 sm:$0xff]   ;;  %v2453_v52 = vld [vmem:[#allocation7 + $0x180] ss:$16 sps:$4 sm:$0xff]   ;;  %vm2855_vm8 = vmmov 0  }
  0x6b   :  { %v102_v48 = vpack.c.bf16 %v96_v46, %v96_v46  ;;  %v2448_v49 = vld [vmem:[#allocation7 + $0x168] ss:$16 sps:$4 sm:$0xff]   ;;  %v2451_v51 = vld [vmem:[#allocation7 + $0x18c] ss:$16 sps:$4 sm:$0xff]   ;;  %v2455_v54 = vld [vmem:[#allocation7 + $0x1a4] ss:$16 sps:$4 sm:$0xff]  }
  0x6c   :  { %1290 = vmatpush1.bf16.msra.mxu0 %v2405_v18  ;;  %1413 = vmatpush1.bf16.msra.mxu1 %v2406_v19  ;;  %v2454_v53 = vld [vmem:[#allocation7 + $0x188] ss:$16 sps:$4 sm:$0xff]   ;;  %v2457_v55 = vld [vmem:[#allocation7 + $0x1ac] ss:$16 sps:$4 sm:$0xff]   ;;  %v2459_v56 = vld [vmem:[#allocation7 + $0x1a0] ss:$16 sps:$4 sm:$0xff]  }
  0x6d   :  { %1291 = vmatprep.subr.bf16.mxu0 %v2407_v20  ;;  %1414 = vmatprep.subr.bf16.mxu1 %v2409_v21  ;;  %v2460_v57 = vld [vmem:[#allocation7 + $0x1a8] ss:$16 sps:$4 sm:$0xff]   ;;  %v2461_v58 = vld [vmem:[#allocation7 + $0x1c4] ss:$16 sps:$4 sm:$0xff]   ;;  %v2463_v59 = vld [vmem:[#allocation7 + $0x1cc] ss:$16 sps:$4 sm:$0xff]  }
  0x6e   :  { %1313 = vmatprep.mubr.bf16.mxu0 %v102_v48  ;;  %1436 = vmatprep.mubr.bf16.mxu1 %v102_v48  ;;  %v2465_v60 = vld [vmem:[#allocation7 + $0x1c0] ss:$16 sps:$4 sm:$0xff]   ;;  %v2466_v61 = vld [vmem:[#allocation7 + $0x1c8] ss:$16 sps:$4 sm:$0xff]   ;;  %v2467_v62 = vld [vmem:[#allocation7 + $0x1e4] ss:$16 sps:$4 sm:$0xff]  }
  0x6f   :  { %v2469_v63 = vld [vmem:[#allocation7 + $0x1ec] ss:$16 sps:$4 sm:$0xff]   ;;  %v2471_v0 = vld [vmem:[#allocation7 + $0x1e0] ss:$16 sps:$4 sm:$0xff]   ;;  %v2472_v1 = vld [vmem:[#allocation7 + $0x1e8] ss:$16 sps:$4 sm:$0xff]  }
  0x70   :  { %1292 = vmatpush1.bf16.msra.mxu0 %v2411_v22  ;;  %1415 = vmatpush1.bf16.msra.mxu1 %v2412_v23  ;;  %v95_v2 = vld [vmem:[#allocation2] sm:$0xff]  ;;  %v2478_v4 = vld [vmem:[#allocation7 + $0x20c] ss:$16 sps:$4 sm:$0xff]   ;;  %v2476_v7 = vld [vmem:[#allocation7 + $0x208] ss:$16 sps:$4 sm:$0xff]   ;;  %s2856_s23 = smov [#allocation11]  }
  0x71   :  { %1293 = vmatprep.subr.bf16.mxu0 %v2413_v24  ;;  %1416 = vmatprep.subr.bf16.mxu1 %v2415_v25  ;;  %v2475_v3 = vld [vmem:[#allocation7 + $0x204] ss:$16 sps:$4 sm:$0xff]   ;;  %v101_v5 = vpack.c.bf16 %v95_v2, %v95_v2  ;;  %v2473_v6 = vld [vmem:[#allocation7 + $0x200] ss:$16 sps:$4 sm:$0xff]   ;;  %v2484_v9 = vld [vmem:[#allocation7 + $0x22c] ss:$16 sps:$4 sm:$0xff]  }
  0x72   :  { %v2481_v8 = vld [vmem:[#allocation7 + $0x224] ss:$16 sps:$4 sm:$0xff]   ;;  %v2479_v10 = vld [vmem:[#allocation7 + $0x220] ss:$16 sps:$4 sm:$0xff]   ;;  %v2482_v11 = vld [vmem:[#allocation7 + $0x228] ss:$16 sps:$4 sm:$0xff]  }
  0x73   :  { %v2487_v12 = vld [vmem:[#allocation7 + $0x244] ss:$16 sps:$4 sm:$0xff]   ;;  %v2490_v13 = vld [vmem:[#allocation7 + $0x24c] ss:$16 sps:$4 sm:$0xff]   ;;  %v2485_v14 = vld [vmem:[#allocation7 + $0x240] ss:$16 sps:$4 sm:$0xff]  }
  0x74   :  { %1294 = vmatpush1.bf16.msra.mxu0 %v2417_v26  ;;  %1417 = vmatpush1.bf16.msra.mxu1 %v2418_v27  ;;  %v2488_v15 = vld [vmem:[#allocation7 + $0x248] ss:$16 sps:$4 sm:$0xff]   ;;  %v2493_v16 = vld [vmem:[#allocation7 + $0x264] ss:$16 sps:$4 sm:$0xff]   ;;  %v2496_v17 = vld [vmem:[#allocation7 + $0x26c] ss:$16 sps:$4 sm:$0xff]  }
  0x75   :  { %1295 = vmatprep.subr.bf16.mxu0 %v2419_v28  ;;  %1418 = vmatprep.subr.bf16.mxu1 %v2421_v29  ;;  %v2491_v18 = vld [vmem:[#allocation7 + $0x260] ss:$16 sps:$4 sm:$0xff]   ;;  %v2494_v19 = vld [vmem:[#allocation7 + $0x268] ss:$16 sps:$4 sm:$0xff]   ;;  %v2499_v20 = vld [vmem:[#allocation7 + $0x284] ss:$16 sps:$4 sm:$0xff]  }
  0x76   :  { %v2502_v21 = vld [vmem:[#allocation7 + $0x28c] ss:$16 sps:$4 sm:$0xff]   ;;  %v2497_v22 = vld [vmem:[#allocation7 + $0x280] ss:$16 sps:$4 sm:$0xff]   ;;  %v2500_v23 = vld [vmem:[#allocation7 + $0x288] ss:$16 sps:$4 sm:$0xff]  }
  0x77   :  { %v2505_v24 = vld [vmem:[#allocation7 + $0x2a4] ss:$16 sps:$4 sm:$0xff]   ;;  %v2508_v25 = vld [vmem:[#allocation7 + $0x2ac] ss:$16 sps:$4 sm:$0xff]   ;;  %v2503_v26 = vld [vmem:[#allocation7 + $0x2a0] ss:$16 sps:$4 sm:$0xff]  }
  0x78   :  { %1296 = vmatpush1.bf16.msra.mxu0 %v2423_v30  ;;  %1419 = vmatpush1.bf16.msra.mxu1 %v2424_v31  ;;  %v2506_v27 = vld [vmem:[#allocation7 + $0x2a8] ss:$16 sps:$4 sm:$0xff]   ;;  %v2511_v28 = vld [vmem:[#allocation7 + $0x2c4] ss:$16 sps:$4 sm:$0xff]   ;;  %v2514_v29 = vld [vmem:[#allocation7 + $0x2cc] ss:$16 sps:$4 sm:$0xff]  }
  0x79   :  { %1297 = vmatprep.subr.bf16.mxu0 %v2425_v32  ;;  %1420 = vmatprep.subr.bf16.mxu1 %v2427_v33  ;;  %v98_v30 = vld [vmem:[#allocation2 + $0x18] sm:$0xff]  ;;  %v2509_v31 = vld [vmem:[#allocation7 + $0x2c0] ss:$16 sps:$4 sm:$0xff]   ;;  %v2535_v46 = vld [vmem:[#allocation7 + $0x344] ss:$16 sps:$4 sm:$0xff]  }
  0x7a   :  { %v104_v32 = vpack.c.bf16 %v98_v30, %v98_v30  ;;  %v2512_v33 = vld [vmem:[#allocation7 + $0x2c8] ss:$16 sps:$4 sm:$0xff]   ;;  %v2533_v48 = vld [vmem:[#allocation7 + $0x340] ss:$16 sps:$4 sm:$0xff]   ;;  %v2565_v2 = vld [vmem:[#allocation7 + $0x3e4] ss:$16 sps:$4 sm:$0xff]  }
  0x7b   :  { %v2601_v30 = vld [vmem:[#allocation7 + $0x4a4] ss:$16 sps:$4 sm:$0xff]  }
  0x7c   :  { %1298 = vmatpush1.bf16.msra.mxu0 %v2429_v34  ;;  %1421 = vmatpush1.bf16.msra.mxu1 %v2430_v35  ;;  %v2517_v34 = vld [vmem:[#allocation7 + $0x2e4] ss:$16 sps:$4 sm:$0xff]   ;;  %v2520_v35 = vld [vmem:[#allocation7 + $0x2ec] ss:$16 sps:$4 sm:$0xff]  }
  0x7d   :  { %1299 = vmatprep.subr.bf16.mxu0 %v2431_v36  ;;  %1422 = vmatprep.subr.bf16.mxu1 %v2433_v37  ;;  %v2515_v36 = vld [vmem:[#allocation7 + $0x2e0] ss:$16 sps:$4 sm:$0xff]   ;;  %v2518_v37 = vld [vmem:[#allocation7 + $0x2e8] ss:$16 sps:$4 sm:$0xff]  }
  0x80   :  { %1300 = vmatpush1.bf16.msra.mxu0 %v2435_v38  ;;  %1423 = vmatpush1.bf16.msra.mxu1 %v2436_v39  ;;  %v2523_v38 = vld [vmem:[#allocation7 + $0x304] ss:$16 sps:$4 sm:$0xff]   ;;  %v2526_v39 = vld [vmem:[#allocation7 + $0x30c] ss:$16 sps:$4 sm:$0xff]  }
  0x81   :  { %1301 = vmatprep.subr.bf16.mxu0 %v2437_v40  ;;  %1424 = vmatprep.subr.bf16.mxu1 %v2439_v41  ;;  %v2521_v40 = vld [vmem:[#allocation7 + $0x300] ss:$16 sps:$4 sm:$0xff]   ;;  %v2524_v41 = vld [vmem:[#allocation7 + $0x308] ss:$16 sps:$4 sm:$0xff]  }
  0x84   :  { %1302 = vmatpush1.bf16.msra.mxu0 %v2441_v42  ;;  %1425 = vmatpush1.bf16.msra.mxu1 %v2442_v43  ;;  %v2529_v42 = vld [vmem:[#allocation7 + $0x324] ss:$16 sps:$4 sm:$0xff]   ;;  %v2532_v43 = vld [vmem:[#allocation7 + $0x32c] ss:$16 sps:$4 sm:$0xff]  }
  0x85   :  { %1303 = vmatprep.subr.bf16.mxu0 %v2443_v44  ;;  %1426 = vmatprep.subr.bf16.mxu1 %v2445_v45  ;;  %v2527_v44 = vld [vmem:[#allocation7 + $0x320] ss:$16 sps:$4 sm:$0xff]   ;;  %v2530_v45 = vld [vmem:[#allocation7 + $0x328] ss:$16 sps:$4 sm:$0xff]  }
  0x88   :  { %1304 = vmatpush1.bf16.msra.mxu0 %v2447_v47  ;;  %1427 = vmatpush1.bf16.msra.mxu1 %v2448_v49  ;;  %v2538_v47 = vld [vmem:[#allocation7 + $0x34c] ss:$16 sps:$4 sm:$0xff]   ;;  %v2536_v49 = vld [vmem:[#allocation7 + $0x348] ss:$16 sps:$4 sm:$0xff]  }
  0x89   :  { %1305 = vmatprep.subr.bf16.mxu0 %v2449_v50  ;;  %1428 = vmatprep.subr.bf16.mxu1 %v2451_v51  ;;  %v2541_v50 = vld [vmem:[#allocation7 + $0x364] ss:$16 sps:$4 sm:$0xff]   ;;  %v2544_v51 = vld [vmem:[#allocation7 + $0x36c] ss:$16 sps:$4 sm:$0xff]  }
  0x8c   :  { %1306 = vmatpush1.bf16.msra.mxu0 %v2453_v52  ;;  %1429 = vmatpush1.bf16.msra.mxu1 %v2454_v53  ;;  %v2539_v52 = vld [vmem:[#allocation7 + $0x360] ss:$16 sps:$4 sm:$0xff]   ;;  %v2542_v53 = vld [vmem:[#allocation7 + $0x368] ss:$16 sps:$4 sm:$0xff]  }
  0x8d   :  { %1307 = vmatprep.subr.bf16.mxu0 %v2455_v54  ;;  %1430 = vmatprep.subr.bf16.mxu1 %v2457_v55  ;;  %v2547_v54 = vld [vmem:[#allocation7 + $0x384] ss:$16 sps:$4 sm:$0xff]   ;;  %v2550_v55 = vld [vmem:[#allocation7 + $0x38c] ss:$16 sps:$4 sm:$0xff]  }
  0x90   :  { %1308 = vmatpush1.bf16.msra.mxu0 %v2459_v56  ;;  %1431 = vmatpush1.bf16.msra.mxu1 %v2460_v57  ;;  %v2545_v56 = vld [vmem:[#allocation7 + $0x380] ss:$16 sps:$4 sm:$0xff]   ;;  %v2548_v57 = vld [vmem:[#allocation7 + $0x388] ss:$16 sps:$4 sm:$0xff]  }
  0x91   :  { %1309 = vmatprep.subr.bf16.mxu0 %v2461_v58  ;;  %1432 = vmatprep.subr.bf16.mxu1 %v2463_v59  ;;  %v2553_v58 = vld [vmem:[#allocation7 + $0x3a4] ss:$16 sps:$4 sm:$0xff]   ;;  %v2556_v59 = vld [vmem:[#allocation7 + $0x3ac] ss:$16 sps:$4 sm:$0xff]  }
  0x94   :  { %1310 = vmatpush1.bf16.msra.mxu0 %v2465_v60  ;;  %1433 = vmatpush1.bf16.msra.mxu1 %v2466_v61  ;;  %v2551_v60 = vld [vmem:[#allocation7 + $0x3a0] ss:$16 sps:$4 sm:$0xff]   ;;  %v2554_v61 = vld [vmem:[#allocation7 + $0x3a8] ss:$16 sps:$4 sm:$0xff]  }
  0x95   :  { %1311 = vmatprep.subr.bf16.mxu0 %v2467_v62  ;;  %1434 = vmatprep.subr.bf16.mxu1 %v2469_v63  ;;  %v2559_v62 = vld [vmem:[#allocation7 + $0x3c4] ss:$16 sps:$4 sm:$0xff]   ;;  %v2562_v63 = vld [vmem:[#allocation7 + $0x3cc] ss:$16 sps:$4 sm:$0xff]  }
  0x98   :  { %1312 = vmatpush1.bf16.msra.mxu0 %v2471_v0  ;;  %1435 = vmatpush1.bf16.msra.mxu1 %v2472_v1  ;;  %v2557_v0 = vld [vmem:[#allocation7 + $0x3c0] ss:$16 sps:$4 sm:$0xff]   ;;  %v2560_v1 = vld [vmem:[#allocation7 + $0x3c8] ss:$16 sps:$4 sm:$0xff]  }
  0x99   :  { %1322 = vmatprep.subr.bf16.mxu0 %v2475_v3  ;;  %1445 = vmatprep.subr.bf16.mxu1 %v2478_v4  ;;  %v2568_v3 = vld [vmem:[#allocation7 + $0x3ec] ss:$16 sps:$4 sm:$0xff]   ;;  %v2563_v4 = vld [vmem:[#allocation7 + $0x3e0] ss:$16 sps:$4 sm:$0xff]  }
  0x9b   :  { %1314 = vmatmul.mubr.bf16.vlgmr.msra.gmra.mrb[0].mxu0 %v101_v5  ;;  %1437 = vmatmul.mubr.bf16.vlgmr.msra.gmra.mrb[0].mxu1 %v101_v5  ;;  %v2566_v5 = vld [vmem:[#allocation7 + $0x3e8] ss:$16 sps:$4 sm:$0xff]  }
  0x9c   :  { %1323 = vmatpush1.bf16.msra.mxu0 %v2473_v6  ;;  %1446 = vmatpush1.bf16.msra.mxu1 %v2476_v7  ;;  %v2571_v6 = vld [vmem:[#allocation7 + $0x404] ss:$16 sps:$4 sm:$0xff]  }
  0x9d   :  { %1324 = vmatprep.subr.bf16.mxu0 %v2481_v8  ;;  %1447 = vmatprep.subr.bf16.mxu1 %v2484_v9  ;;  %v97_v7 = vld [vmem:[#allocation2 + $0x10] sm:$0xff]  ;;  %v2574_v8 = vld [vmem:[#allocation7 + $0x40c] ss:$16 sps:$4 sm:$0xff]  }
  0x9e   :  { %1354 = vmatprep.mubr.bf16.mxu0 %v104_v32  ;;  %1477 = vmatprep.mubr.bf16.mxu1 %v104_v32  ;;  %v2569_v9 = vld [vmem:[#allocation7 + $0x400] ss:$16 sps:$4 sm:$0xff]  }
  0x9f   :  { %v2599_v32 = vld [vmem:[#allocation7 + $0x4a0] ss:$16 sps:$4 sm:$0xff]  }
  0xa0   :  { %1325 = vmatpush1.bf16.msra.mxu0 %v2479_v10  ;;  %1448 = vmatpush1.bf16.msra.mxu1 %v2482_v11  ;;  %v103_v10 = vpack.c.bf16 %v97_v7, %v97_v7  ;;  %v2572_v11 = vld [vmem:[#allocation7 + $0x408] ss:$16 sps:$4 sm:$0xff]   ;;  %v2664_v7 = vld [vmem:[#allocation7 + $0x5ec] ss:$16 sps:$4 sm:$0xff]  }
  0xa1   :  { %1326 = vmatprep.subr.bf16.mxu0 %v2487_v12  ;;  %1449 = vmatprep.subr.bf16.mxu1 %v2490_v13  ;;  %v2577_v12 = vld [vmem:[#allocation7 + $0x424] ss:$16 sps:$4 sm:$0xff]   ;;  %v2580_v13 = vld [vmem:[#allocation7 + $0x42c] ss:$16 sps:$4 sm:$0xff]  }
  0xa4   :  { %1327 = vmatpush1.bf16.msra.mxu0 %v2485_v14  ;;  %1450 = vmatpush1.bf16.msra.mxu1 %v2488_v15  ;;  %v100_v14 = vld [vmem:[#allocation2 + $0x28] sm:$0xff]  ;;  %v2575_v15 = vld [vmem:[#allocation7 + $0x420] ss:$16 sps:$4 sm:$0xff]  }
  0xa5   :  { %1328 = vmatprep.subr.bf16.mxu0 %v2493_v16  ;;  %1451 = vmatprep.subr.bf16.mxu1 %v2496_v17  ;;  %v106_v16 = vpack.c.bf16 %v100_v14, %v100_v14  ;;  %v2578_v17 = vld [vmem:[#allocation7 + $0x428] ss:$16 sps:$4 sm:$0xff]   ;;  %v2667_v14 = vld [vmem:[#allocation8] sm:$0xff]  }
  0xa8   :  { %1329 = vmatpush1.bf16.msra.mxu0 %v2491_v18  ;;  %1452 = vmatpush1.bf16.msra.mxu1 %v2494_v19  ;;  %v2583_v18 = vld [vmem:[#allocation7 + $0x444] ss:$16 sps:$4 sm:$0xff]   ;;  %v2586_v19 = vld [vmem:[#allocation7 + $0x44c] ss:$16 sps:$4 sm:$0xff]  }
  0xa9   :  { %1330 = vmatprep.subr.bf16.mxu0 %v2499_v20  ;;  %1453 = vmatprep.subr.bf16.mxu1 %v2502_v21  ;;  %v2581_v20 = vld [vmem:[#allocation7 + $0x440] ss:$16 sps:$4 sm:$0xff]   ;;  %v2584_v21 = vld [vmem:[#allocation7 + $0x448] ss:$16 sps:$4 sm:$0xff]  }
  0xac   :  { %1331 = vmatpush1.bf16.msra.mxu0 %v2497_v22  ;;  %1454 = vmatpush1.bf16.msra.mxu1 %v2500_v23  ;;  %v2589_v22 = vld [vmem:[#allocation7 + $0x464] ss:$16 sps:$4 sm:$0xff]   ;;  %v2592_v23 = vld [vmem:[#allocation7 + $0x46c] ss:$16 sps:$4 sm:$0xff]  }
  0xad   :  { %1332 = vmatprep.subr.bf16.mxu0 %v2505_v24  ;;  %1455 = vmatprep.subr.bf16.mxu1 %v2508_v25  ;;  %v2587_v24 = vld [vmem:[#allocation7 + $0x460] ss:$16 sps:$4 sm:$0xff]   ;;  %v2590_v25 = vld [vmem:[#allocation7 + $0x468] ss:$16 sps:$4 sm:$0xff]  }
  0xb0   :  { %1333 = vmatpush1.bf16.msra.mxu0 %v2503_v26  ;;  %1456 = vmatpush1.bf16.msra.mxu1 %v2506_v27  ;;  %v2595_v26 = vld [vmem:[#allocation7 + $0x484] ss:$16 sps:$4 sm:$0xff]   ;;  %v2598_v27 = vld [vmem:[#allocation7 + $0x48c] ss:$16 sps:$4 sm:$0xff]  }
  0xb1   :  { %1334 = vmatprep.subr.bf16.mxu0 %v2511_v28  ;;  %1457 = vmatprep.subr.bf16.mxu1 %v2514_v29  ;;  %v2593_v28 = vld [vmem:[#allocation7 + $0x480] ss:$16 sps:$4 sm:$0xff]   ;;  %v2596_v29 = vld [vmem:[#allocation7 + $0x488] ss:$16 sps:$4 sm:$0xff]  }
  0xb4   :  { %1335 = vmatpush1.bf16.msra.mxu0 %v2509_v31  ;;  %1458 = vmatpush1.bf16.msra.mxu1 %v2512_v33  ;;  %v2604_v31 = vld [vmem:[#allocation7 + $0x4ac] ss:$16 sps:$4 sm:$0xff]   ;;  %v2602_v33 = vld [vmem:[#allocation7 + $0x4a8] ss:$16 sps:$4 sm:$0xff]  }
  0xb5   :  { %1336 = vmatprep.subr.bf16.mxu0 %v2517_v34  ;;  %1459 = vmatprep.subr.bf16.mxu1 %v2520_v35  ;;  %v2607_v34 = vld [vmem:[#allocation7 + $0x4c4] ss:$16 sps:$4 sm:$0xff]   ;;  %v2610_v35 = vld [vmem:[#allocation7 + $0x4cc] ss:$16 sps:$4 sm:$0xff]  }
  0xb8   :  { %1337 = vmatpush1.bf16.msra.mxu0 %v2515_v36  ;;  %1460 = vmatpush1.bf16.msra.mxu1 %v2518_v37  ;;  %v2605_v36 = vld [vmem:[#allocation7 + $0x4c0] ss:$16 sps:$4 sm:$0xff]   ;;  %v2608_v37 = vld [vmem:[#allocation7 + $0x4c8] ss:$16 sps:$4 sm:$0xff]  }
  0xb9   :  { %1338 = vmatprep.subr.bf16.mxu0 %v2523_v38  ;;  %1461 = vmatprep.subr.bf16.mxu1 %v2526_v39  ;;  %v2613_v38 = vld [vmem:[#allocation7 + $0x4e4] ss:$16 sps:$4 sm:$0xff]   ;;  %v2616_v39 = vld [vmem:[#allocation7 + $0x4ec] ss:$16 sps:$4 sm:$0xff]  }
  0xbc   :  { %1339 = vmatpush1.bf16.msra.mxu0 %v2521_v40  ;;  %1462 = vmatpush1.bf16.msra.mxu1 %v2524_v41  ;;  %v2611_v40 = vld [vmem:[#allocation7 + $0x4e0] ss:$16 sps:$4 sm:$0xff]   ;;  %v2614_v41 = vld [vmem:[#allocation7 + $0x4e8] ss:$16 sps:$4 sm:$0xff]  }
  0xbd   :  { %1340 = vmatprep.subr.bf16.mxu0 %v2529_v42  ;;  %1463 = vmatprep.subr.bf16.mxu1 %v2532_v43  ;;  %v2619_v42 = vld [vmem:[#allocation7 + $0x504] ss:$16 sps:$4 sm:$0xff]   ;;  %v2622_v43 = vld [vmem:[#allocation7 + $0x50c] ss:$16 sps:$4 sm:$0xff]  }
  0xc0   :  { %1341 = vmatpush1.bf16.msra.mxu0 %v2527_v44  ;;  %1464 = vmatpush1.bf16.msra.mxu1 %v2530_v45  ;;  %v2617_v44 = vld [vmem:[#allocation7 + $0x500] ss:$16 sps:$4 sm:$0xff]   ;;  %v2620_v45 = vld [vmem:[#allocation7 + $0x508] ss:$16 sps:$4 sm:$0xff]  }
  0xc1   :  { %1342 = vmatprep.subr.bf16.mxu0 %v2535_v46  ;;  %1465 = vmatprep.subr.bf16.mxu1 %v2538_v47  ;;  %v2625_v46 = vld [vmem:[#allocation7 + $0x524] ss:$16 sps:$4 sm:$0xff]   ;;  %v2628_v47 = vld [vmem:[#allocation7 + $0x52c] ss:$16 sps:$4 sm:$0xff]  }
  0xc4   :  { %1343 = vmatpush1.bf16.msra.mxu0 %v2533_v48  ;;  %1466 = vmatpush1.bf16.msra.mxu1 %v2536_v49  ;;  %v2623_v48 = vld [vmem:[#allocation7 + $0x520] ss:$16 sps:$4 sm:$0xff]   ;;  %v2626_v49 = vld [vmem:[#allocation7 + $0x528] ss:$16 sps:$4 sm:$0xff]  }
  0xc5   :  { %1344 = vmatprep.subr.bf16.mxu0 %v2541_v50  ;;  %1467 = vmatprep.subr.bf16.mxu1 %v2544_v51  ;;  %v2631_v50 = vld [vmem:[#allocation7 + $0x544] ss:$16 sps:$4 sm:$0xff]   ;;  %v2634_v51 = vld [vmem:[#allocation7 + $0x54c] ss:$16 sps:$4 sm:$0xff]  }
  0xc8   :  { %1345 = vmatpush1.bf16.msra.mxu0 %v2539_v52  ;;  %1468 = vmatpush1.bf16.msra.mxu1 %v2542_v53  ;;  %v2629_v52 = vld [vmem:[#allocation7 + $0x540] ss:$16 sps:$4 sm:$0xff]   ;;  %v2632_v53 = vld [vmem:[#allocation7 + $0x548] ss:$16 sps:$4 sm:$0xff]  }
  0xc9   :  { %1346 = vmatprep.subr.bf16.mxu0 %v2547_v54  ;;  %1469 = vmatprep.subr.bf16.mxu1 %v2550_v55  ;;  %v2637_v54 = vld [vmem:[#allocation7 + $0x564] ss:$16 sps:$4 sm:$0xff]   ;;  %v2640_v55 = vld [vmem:[#allocation7 + $0x56c] ss:$16 sps:$4 sm:$0xff]  }
  0xcc   :  { %1347 = vmatpush1.bf16.msra.mxu0 %v2545_v56  ;;  %1470 = vmatpush1.bf16.msra.mxu1 %v2548_v57  ;;  %v2635_v56 = vld [vmem:[#allocation7 + $0x560] ss:$16 sps:$4 sm:$0xff]   ;;  %v2638_v57 = vld [vmem:[#allocation7 + $0x568] ss:$16 sps:$4 sm:$0xff]  }
  0xcd   :  { %1348 = vmatprep.subr.bf16.mxu0 %v2553_v58  ;;  %1471 = vmatprep.subr.bf16.mxu1 %v2556_v59  ;;  %v2643_v58 = vld [vmem:[#allocation7 + $0x584] ss:$16 sps:$4 sm:$0xff]   ;;  %v2646_v59 = vld [vmem:[#allocation7 + $0x58c] ss:$16 sps:$4 sm:$0xff]  }
  0xd0   :  { %1349 = vmatpush1.bf16.msra.mxu0 %v2551_v60  ;;  %1472 = vmatpush1.bf16.msra.mxu1 %v2554_v61  ;;  %v2641_v60 = vld [vmem:[#allocation7 + $0x580] ss:$16 sps:$4 sm:$0xff]   ;;  %v2644_v61 = vld [vmem:[#allocation7 + $0x588] ss:$16 sps:$4 sm:$0xff]  }
  0xd1   :  { %1350 = vmatprep.subr.bf16.mxu0 %v2559_v62  ;;  %1473 = vmatprep.subr.bf16.mxu1 %v2562_v63  ;;  %v2649_v62 = vld [vmem:[#allocation7 + $0x5a4] ss:$16 sps:$4 sm:$0xff]   ;;  %v2652_v63 = vld [vmem:[#allocation7 + $0x5ac] ss:$16 sps:$4 sm:$0xff]  }
  0xd4   :  { %1351 = vmatpush1.bf16.msra.mxu0 %v2557_v0  ;;  %1474 = vmatpush1.bf16.msra.mxu1 %v2560_v1  ;;  %v2647_v0 = vld [vmem:[#allocation7 + $0x5a0] ss:$16 sps:$4 sm:$0xff]   ;;  %v2650_v1 = vld [vmem:[#allocation7 + $0x5a8] ss:$16 sps:$4 sm:$0xff]  }
  0xd5   :  { %1352 = vmatprep.subr.bf16.mxu0 %v2565_v2  ;;  %1475 = vmatprep.subr.bf16.mxu1 %v2568_v3  ;;  %v2655_v2 = vld [vmem:[#allocation7 + $0x5c4] ss:$16 sps:$4 sm:$0xff]   ;;  %v2658_v3 = vld [vmem:[#allocation7 + $0x5cc] ss:$16 sps:$4 sm:$0xff]  }
  0xd8   :  { %1353 = vmatpush1.bf16.msra.mxu0 %v2563_v4  ;;  %1476 = vmatpush1.bf16.msra.mxu1 %v2566_v5  ;;  %v2653_v4 = vld [vmem:[#allocation7 + $0x5c0] ss:$16 sps:$4 sm:$0xff]   ;;  %v2656_v5 = vld [vmem:[#allocation7 + $0x5c8] ss:$16 sps:$4 sm:$0xff]  }
  0xd9   :  { %1363 = vmatprep.subr.bf16.mxu0 %v2571_v6  ;;  %1486 = vmatprep.subr.bf16.mxu1 %v2574_v8  ;;  %v2661_v6 = vld [vmem:[#allocation7 + $0x5e4] ss:$16 sps:$4 sm:$0xff]   ;;  %v2659_v8 = vld [vmem:[#allocation7 + $0x5e0] ss:$16 sps:$4 sm:$0xff]  }
  0xdb   :  { %1355 = vmatmul.mubr.bf16.vlgmr.msra.gmra.mrb[0].mxu0 %v103_v10  ;;  %1478 = vmatmul.mubr.bf16.vlgmr.msra.gmra.mrb[0].mxu1 %v103_v10  ;;  %v99_v10 = vld [vmem:[#allocation2 + $0x20] sm:$0xff] }
  0xdc   :  { %1364 = vmatpush1.bf16.msra.mxu0 %v2569_v9  ;;  %1487 = vmatpush1.bf16.msra.mxu1 %v2572_v11  ;;  %v2662_v9 = vld [vmem:[#allocation7 + $0x5e8] ss:$16 sps:$4 sm:$0xff]   ;;  %v2665_v11 = vld [vmem:[#allocation8 + $0x40] sm:$0xff]  }
  0xdd   :  { %1365 = vmatprep.subr.bf16.mxu0 %v2577_v12  ;;  %1488 = vmatprep.subr.bf16.mxu1 %v2580_v13  ;;  %v2666_v12 = vld [vmem:[#allocation8 + $0xc0] sm:$0xff]   ;;  %v105_v13 = vpack.c.bf16 %v99_v10, %v99_v10 }
  0xde   :  { %1395 = vmatprep.mubr.bf16.mxu0 %v106_v16  ;;  %1518 = vmatprep.mubr.bf16.mxu1 %v106_v16  ;;  %v2669_v16 = vld [vmem:[#allocation8 + $0x48] sm:$0xff]  }
  0xe0   :  { %1366 = vmatpush1.bf16.msra.mxu0 %v2575_v15  ;;  %1489 = vmatpush1.bf16.msra.mxu1 %v2578_v17  ;;  %v2668_v15 = vld [vmem:[#allocation8 + $0x80] sm:$0xff]   ;;  %v2670_v17 = vld [vmem:[#allocation8 + $0xc8] sm:$0xff]  }
  0xe1   :  { %1367 = vmatprep.subr.bf16.mxu0 %v2583_v18  ;;  %1490 = vmatprep.subr.bf16.mxu1 %v2586_v19  ;;  %v2671_v18 = vld [vmem:[#allocation8 + $0x8] sm:$0xff]  }
  0xe2   :  { %v2672_v19 = vld [vmem:[#allocation8 + $0x88] sm:$0xff]  }
  0xe4   :  { %1368 = vmatpush1.bf16.msra.mxu0 %v2581_v20  ;;  %1491 = vmatpush1.bf16.msra.mxu1 %v2584_v21  ;;  %v2673_v20 = vld [vmem:[#allocation8 + $0x50] sm:$0xff]  }
  0xe5   :  { %1369 = vmatprep.subr.bf16.mxu0 %v2589_v22  ;;  %1492 = vmatprep.subr.bf16.mxu1 %v2592_v23  ;;  %v2674_v21 = vld [vmem:[#allocation8 + $0xd0] sm:$0xff]  }
  0xe6   :  { %v2675_v22 = vld [vmem:[#allocation8 + $0x10] sm:$0xff]  }
  0xe7   :  { %v2676_v23 = vld [vmem:[#allocation8 + $0x90] sm:$0xff]  }
  0xe8   :  { %1370 = vmatpush1.bf16.msra.mxu0 %v2587_v24  ;;  %1493 = vmatpush1.bf16.msra.mxu1 %v2590_v25  ;;  %v2677_v24 = vld [vmem:[#allocation8 + $0x58] sm:$0xff]  }
  0xe9   :  { %1371 = vmatprep.subr.bf16.mxu0 %v2595_v26  ;;  %1494 = vmatprep.subr.bf16.mxu1 %v2598_v27  ;;  %v2678_v25 = vld [vmem:[#allocation8 + $0xd8] sm:$0xff]  }
  0xea   :  { %v2679_v26 = vld [vmem:[#allocation8 + $0x18] sm:$0xff]  }
  0xeb   :  { %v2680_v27 = vld [vmem:[#allocation8 + $0x98] sm:$0xff]  }
  0xec   :  { %1372 = vmatpush1.bf16.msra.mxu0 %v2593_v28  ;;  %1495 = vmatpush1.bf16.msra.mxu1 %v2596_v29  ;;  %v2681_v28 = vld [vmem:[#allocation8 + $0x60] sm:$0xff]  }
  0xed   :  { %1373 = vmatprep.subr.bf16.mxu0 %v2601_v30  ;;  %1496 = vmatprep.subr.bf16.mxu1 %v2604_v31  ;;  %v2682_v29 = vld [vmem:[#allocation8 + $0xe0] sm:$0xff]  }
  0xee   :  { %v2683_v30 = vld [vmem:[#allocation8 + $0x20] sm:$0xff]  }
  0xef   :  { %v2684_v31 = vld [vmem:[#allocation8 + $0xa0] sm:$0xff]  }
  0xf0   :  { %1374 = vmatpush1.bf16.msra.mxu0 %v2599_v32  ;;  %1497 = vmatpush1.bf16.msra.mxu1 %v2602_v33  ;;  %v2685_v32 = vld [vmem:[#allocation8 + $0x68] sm:$0xff]  }
  0xf1   :  { %1375 = vmatprep.subr.bf16.mxu0 %v2607_v34  ;;  %1498 = vmatprep.subr.bf16.mxu1 %v2610_v35  ;;  %v2686_v33 = vld [vmem:[#allocation8 + $0xe8] sm:$0xff]  }
  0xf2   :  { %v2687_v34 = vld [vmem:[#allocation8 + $0x28] sm:$0xff]  }
  0xf3   :  { %v2688_v35 = vld [vmem:[#allocation8 + $0xa8] sm:$0xff]  }
  0xf4   :  { %1376 = vmatpush1.bf16.msra.mxu0 %v2605_v36  ;;  %1499 = vmatpush1.bf16.msra.mxu1 %v2608_v37  ;;  %v2689_v36 = vld [vmem:[#allocation8 + $0x70] sm:$0xff]  }
  0xf5   :  { %1377 = vmatprep.subr.bf16.mxu0 %v2613_v38  ;;  %1500 = vmatprep.subr.bf16.mxu1 %v2616_v39  ;;  %v2690_v37 = vld [vmem:[#allocation8 + $0xf0] sm:$0xff]  }
  0xf6   :  { %v2691_v38 = vld [vmem:[#allocation8 + $0x30] sm:$0xff]  }
  0xf7   :  { %v2692_v39 = vld [vmem:[#allocation8 + $0xb0] sm:$0xff]  }
  0xf8   :  { %1378 = vmatpush1.bf16.msra.mxu0 %v2611_v40  ;;  %1501 = vmatpush1.bf16.msra.mxu1 %v2614_v41  ;;  %v2693_v40 = vld [vmem:[#allocation8 + $0x78] sm:$0xff]  }
  0xf9   :  { %1379 = vmatprep.subr.bf16.mxu0 %v2619_v42  ;;  %1502 = vmatprep.subr.bf16.mxu1 %v2622_v43  ;;  %v2694_v41 = vld [vmem:[#allocation8 + $0xf8] sm:$0xff]  }
  0xfa   :  { %v2695_v42 = vld [vmem:[#allocation8 + $0x38] sm:$0xff]  }
  0xfb   :  { %v2696_v43 = vld [vmem:[#allocation8 + $0xb8] sm:$0xff]  }
  0xfc   :  { %1380 = vmatpush1.bf16.msra.mxu0 %v2617_v44  ;;  %1503 = vmatpush1.bf16.msra.mxu1 %v2620_v45  ;;  %v2854_v44 = vmov 0.0   ;;  %v301_v45 = vlaneseq }
  0xfd   :  { %1381 = vmatprep.subr.bf16.mxu0 %v2625_v46  ;;  %1504 = vmatprep.subr.bf16.mxu1 %v2628_v47 }
  0xfe   :  { %v302_v46 = vshrl.u32 %v301_v45, 7 }
 0x100   :  { %1382 = vmatpush1.bf16.msra.mxu0 %v2623_v48  ;;  %1505 = vmatpush1.bf16.msra.mxu1 %v2626_v49  ;;  %v303_v47 = vsub.s32 0, %v302_v46  ;;  %v311_v48 = vsub.s32 2, %v302_v46  ;;  %v299_v49 = vld [vmem:[%s3015_s3] sm:$0xf] }
 0x101   :  { %1383 = vmatprep.subr.bf16.mxu0 %v2631_v50  ;;  %1506 = vmatprep.subr.bf16.mxu1 %v2634_v51  ;;  %v307_v50 = vsub.s32 1, %v302_v46  ;;  %v315_v51 = vsub.s32 3, %v302_v46 }
 0x104   :  { %1384 = vmatpush1.bf16.msra.mxu0 %v2629_v52  ;;  %1507 = vmatpush1.bf16.msra.mxu1 %v2632_v53  ;;  %v304_v52 = vrot.slane %v299_v49, %v303_v47  ;;  %v312_v53 = vrot.slane %v299_v49, %v311_v48 }
 0x105   :  { %1385 = vmatprep.subr.bf16.mxu0 %v2637_v54  ;;  %1508 = vmatprep.subr.bf16.mxu1 %v2640_v55  ;;  %v308_v54 = vrot.slane %v299_v49, %v307_v50  ;;  %v316_v55 = vrot.slane %v299_v49, %v315_v51 }
 0x108   :  { %1386 = vmatpush1.bf16.msra.mxu0 %v2635_v56  ;;  %1509 = vmatpush1.bf16.msra.mxu1 %v2638_v57  ;;  %v1532_v56 = vld [vmem:[#allocation5 + $0x8] sm:$0xff] }
 0x109   :  { %1387 = vmatprep.subr.bf16.mxu0 %v2643_v58  ;;  %1510 = vmatprep.subr.bf16.mxu1 %v2646_v59  ;;  %v1534_v59 = vld [vmem:[#allocation5 + $0x18] sm:$0xff]  ;;  %vm1536_vm0 = vcmp.lt.u32.totalorder %v1532_v56, 2147483648 }
 0x10a   :  { %vm1538_vm1 = vcmp.lt.u32.totalorder %v1534_v59, 2147483648  ;;  %vm2251_vm3 = vmpackc.low %vm1536_vm0, %vm1536_vm0 }
 0x10b   :  { %vm2257_vm5 = vmpackc.low %vm1538_vm1, %vm1538_vm1 }
 0x10c   :  { %1388 = vmatpush1.bf16.msra.mxu0 %v2641_v60  ;;  %1511 = vmatpush1.bf16.msra.mxu1 %v2644_v61 }
 0x10d   :  { %1389 = vmatprep.subr.bf16.mxu0 %v2649_v62  ;;  %1512 = vmatprep.subr.bf16.mxu1 %v2652_v63 }
 0x110   :  { %1390 = vmatpush1.bf16.msra.mxu0 %v2647_v0  ;;  %1513 = vmatpush1.bf16.msra.mxu1 %v2650_v1  ;;  %v1531_v0 = vld [vmem:[#allocation5] sm:$0xff] }
 0x111   :  { %1391 = vmatprep.subr.bf16.mxu0 %v2655_v2  ;;  %1514 = vmatprep.subr.bf16.mxu1 %v2658_v3  ;;  %vm1535_vm2 = vcmp.lt.u32.totalorder %v1531_v0, 2147483648 }
 0x112   :  { %vm2254_vm6 = vmpackc.low %vm1535_vm2, %vm1535_vm2 }
 0x114   :  { %1392 = vmatpush1.bf16.msra.mxu0 %v2653_v4  ;;  %1515 = vmatpush1.bf16.msra.mxu1 %v2656_v5  ;;  %v1533_v5 = vld [vmem:[#allocation5 + $0x10] sm:$0xff] }
 0x115   :  { %1393 = vmatprep.subr.bf16.mxu0 %v2661_v6  ;;  %1516 = vmatprep.subr.bf16.mxu1 %v2664_v7  ;;  %vm1537_vm4 = vcmp.lt.u32.totalorder %v1533_v5, 2147483648 }
 0x116   :  { %vm2260_vm7 = vmpackc.low %vm1537_vm4, %vm1537_vm4 }
 0x118   :  { %1394 = vmatpush1.bf16.msra.mxu0 %v2659_v8  ;;  %1517 = vmatpush1.bf16.msra.mxu1 %v2662_v9 }
 0x119   :  { %2272 = vmatprep.subr.bf16.mxu0 %v2665_v11  ;;  %2294 = vmatprep.subr.bf16.mxu1 %v2666_v12 }
 0x11b   :  { %1396 = vmatmul.mubr.bf16.vlgmr.msra.gmra.mrb[0].mxu0 %v105_v13  ;;  %1519 = vmatmul.mubr.bf16.vlgmr.msra.gmra.mrb[0].mxu1 %v105_v13 }
 0x11c   :  { %2273 = vmatpush3.bf16.msra.mxu0 %v2667_v14  ;;  %2295 = vmatpush3.bf16.msra.mxu1 %v2668_v15 }
 0x11d   :  { %2274 = vmatprep.subr.bf16.mxu0 %v2669_v16  ;;  %2296 = vmatprep.subr.bf16.mxu1 %v2670_v17 }
 0x120   :  { %2275 = vmatpush3.bf16.msra.mxu0 %v2671_v18  ;;  %2297 = vmatpush3.bf16.msra.mxu1 %v2672_v19  ;;  %v2697_v18 = vld [vmem:[#allocation10] sm:$0xff]  }
 0x121   :  { %2276 = vmatprep.subr.bf16.mxu0 %v2673_v20  ;;  %2298 = vmatprep.subr.bf16.mxu1 %v2674_v21  ;;  %v2698_v21 = vld [vmem:[#allocation10 + $0x8] sm:$0xff]  }
 0x124   :  { %2277 = vmatpush3.bf16.msra.mxu0 %v2675_v22  ;;  %2299 = vmatpush3.bf16.msra.mxu1 %v2676_v23  ;;  %v2699_v22 = vld [vmem:[#allocation10 + $0x10] sm:$0xff]   ;;  %v2700_v23 = vld [vmem:[#allocation10 + $0x18] sm:$0xff]  }
 0x125   :  { %2278 = vmatprep.subr.bf16.mxu0 %v2677_v24  ;;  %2300 = vmatprep.subr.bf16.mxu1 %v2678_v25  ;;  %v2701_v24 = vld [vmem:[#allocation10 + $0x20] sm:$0xff]   ;;  %v2702_v25 = vld [vmem:[#allocation10 + $0x28] sm:$0xff]  }
 0x128   :  { %2279 = vmatpush3.bf16.msra.mxu0 %v2679_v26  ;;  %2301 = vmatpush3.bf16.msra.mxu1 %v2680_v27  ;;  %v2703_v26 = vld [vmem:[#allocation10 + $0x30] sm:$0xff]   ;;  %v2704_v27 = vld [vmem:[#allocation10 + $0x38] sm:$0xff]  }
 0x129   :  { %2280 = vmatprep.subr.bf16.mxu0 %v2681_v28  ;;  %2302 = vmatprep.subr.bf16.mxu1 %v2682_v29 }
 0x12c   :  { %2281 = vmatpush3.bf16.msra.mxu0 %v2683_v30  ;;  %2303 = vmatpush3.bf16.msra.mxu1 %v2684_v31  ;;  %v2218_v30 = vld [vmem:[%s3017_s5] ss:$0 sm:$0xff]  ;;  %s2015_s5 = sshll.u32 %s2856_s23, 4  ;;  %s2016_s5 = int_to_ptr.vmem [resolvable:$true] %s2015_s5 }
 0x12d   :  { %2282 = vmatprep.subr.bf16.mxu0 %v2685_v32  ;;  %2304 = vmatprep.subr.bf16.mxu1 %v2686_v33  ;;  %s2815_s24 = scalar_lea.vmem %s2016_s5, 128  ;;  %p2820_p13 = scmp.lt.s32.totalorder %s2016_s5, %s2016_s5 }
 0x12e   :  { %p2816_p12 = scmp.ne.s32.totalorder %s2016_s5, %s2815_s24  ;;  %p2821_p0 = scmp.lt.s32.totalorder %s2815_s24, %s2815_s24 }
 0x130   :  { %2283 = vmatpush3.bf16.msra.mxu0 %v2687_v34  ;;  %2305 = vmatpush3.bf16.msra.mxu1 %v2688_v35  ;;  %p2822_p1 = por %p2821_p0, %p2820_p13 }
 0x131   :  { %2284 = vmatprep.subr.bf16.mxu0 %v2689_v36  ;;  %2306 = vmatprep.subr.bf16.mxu1 %v2690_v37 }
 0x132   :  { %p2823_p2 = pnand %p2822_p1, %p2816_p12 }
 0x134   :  { %2285 = vmatpush3.bf16.msra.mxu0 %v2691_v38  ;;  %2307 = vmatpush3.bf16.msra.mxu1 %v2692_v39 }
 0x135   :  { %2286 = vmatprep.subr.bf16.mxu0 %v2693_v40  ;;  %2308 = vmatprep.subr.bf16.mxu1 %v2694_v41 }
 0x138   :  { %2287 = vmatpush3.bf16.msra.mxu0 %v2695_v42  ;;  %2309 = vmatpush3.bf16.msra.mxu1 %v2696_v43  ;;  %v2263_v43 = vld [vmem:[%s3019_s7] ss:$0 sm:$0xff] }
 0x139   :  { %2325 = vmatprep.subr.bf16.mxu0 %v2854_v44 }
 0x1ee   :  { %v1397_v57 = vpop.f32.mrb[0].mxu0  ;;  %v1520_v58 = vpop.f32.mrb[0].mxu1 }
 0x1ef   :  { %v2345_v60 = vadd.f32 %v1397_v57, %v304_v52  ;;  %v2347_v61 = vadd.f32 %v1520_v58, %v312_v53  ;;  %v1399_v62 = vpop.f32.mrb[1].mxu0  ;;  %v1522_v63 = vpop.f32.mrb[1].mxu1 }
 0x1f0   :  { %v2346_v1 = vadd.f32 %v1399_v62, %v308_v54  ;;  %v2348_v2 = vadd.f32 %v1522_v63, %v316_v55  ;;  %v1401_v3 = vpop.f32.mrb[2].mxu0  ;;  %v1524_v4 = vpop.f32.mrb[2].mxu1 }
 0x1f1   :  { %v1527_v6 = vmax.f32 %v2345_v60, 0.0  ;;  %v1529_v7 = vmax.f32 %v2347_v61, 0.0  ;;  %v1402_v8 = vpop.f32.mrb[3].mxu0  ;;  %v1525_v9 = vpop.f32.mrb[3].mxu1 }
 0x1f2   :  { %v1528_v10 = vmax.f32 %v2346_v1, 0.0  ;;  %v1530_v11 = vmax.f32 %v2348_v2, 0.0 }
 0x1f3   :  { %v1539_v12 = vadd.f32 %v1527_v6, %v1527_v6  ;;  %v1541_v13 = vadd.f32 %v1529_v7, %v1529_v7 }
 0x1f4   :  { %v1540_v14 = vadd.f32 %v1528_v10, %v1528_v10  ;;  %v1542_v15 = vadd.f32 %v1530_v11, %v1530_v11 }
 0x1f5   :  { %v2255_v19 = vpack.c.bf16 %v1539_v12, %v1539_v12  ;;  %v2261_v20 = vpack.c.bf16 %v1541_v13, %v1541_v13 }
 0x1f6   :  { %v2252_v16 = vpack.c.bf16 %v1540_v14, %v1540_v14  ;;  %v2258_v17 = vpack.c.bf16 %v1542_v15, %v1542_v15 }
 0x1f8   :  { %2253 = vmatprep.mubr.msk.bf16.mxu0 %vm2251_vm3, %v2252_v16  ;;  %2259 = vmatprep.mubr.msk.bf16.mxu1 %vm2257_vm5, %v2258_v17 }
 0x1f9   :  { %2256 = vmatmul.mubr.msk.bf16.vlgmr.msra.gmra.mrb[4].mxu0 %vm2254_vm6, %v2255_v19  ;;  %2262 = vmatmul.mubr.msk.bf16.vlgmr.msra.gmra.mrb[4].mxu1 %vm2260_vm7, %v2261_v20 }
 0x1fa   :  { %2326 = vmatpush3.bf16.msra.mxu0 %v2697_v18  ;;  %2341 = vmatprep.mubr.msk.bf16.mxu0 %vm2855_vm8, %v2854_v44 }
 0x1fb   :  { %2327 = vmatprep.subr.bf16.mxu0 %v2854_v44 }
 0x1fe   :  { %2328 = vmatpush3.bf16.msra.mxu0 %v2698_v21 }
 0x1ff   :  { %2329 = vmatprep.subr.bf16.mxu0 %v2854_v44 }
 0x202   :  { %2330 = vmatpush3.bf16.msra.mxu0 %v2699_v22 }
 0x203   :  { %2331 = vmatprep.subr.bf16.mxu0 %v2854_v44 }
 0x206   :  { %2332 = vmatpush3.bf16.msra.mxu0 %v2700_v23 }
 0x207   :  { %2333 = vmatprep.subr.bf16.mxu0 %v2854_v44 }
 0x20a   :  { %2334 = vmatpush3.bf16.msra.mxu0 %v2701_v24 }
 0x20b   :  { %2335 = vmatprep.subr.bf16.mxu0 %v2854_v44 }
 0x20e   :  { %2336 = vmatpush3.bf16.msra.mxu0 %v2702_v25 }
 0x20f   :  { %2337 = vmatprep.subr.bf16.mxu0 %v2854_v44 }
 0x212   :  { %2338 = vmatpush3.bf16.msra.mxu0 %v2703_v26 }
 0x213   :  { %2339 = vmatprep.subr.bf16.mxu0 %v2854_v44 }
 0x216   :  { %2340 = vmatpush3.bf16.msra.mxu0 %v2704_v27 }
 0x2cc   :  { %v2288_v28 = vpop.f32.mrb[4].mxu0  ;;  %v2310_v29 = vpop.f32.mrb[4].mxu1 }
 0x2cd   :  { %v2289_v31 = vpop.f32.mrb[5].mxu0  ;;  %v2311_v32 = vpop.f32.mrb[5].mxu1 }
 0x2ce   :  { %v2290_v33 = vadd.f32 %v2289_v31, %v2288_v28  ;;  %v2312_v34 = vadd.f32 %v2311_v32, %v2310_v29  ;;  %v2291_v35 = vpop.f32.mrb[6].mxu0  ;;  %v2313_v36 = vpop.f32.mrb[6].mxu1 }
 0x2cf   :  { %v2292_v37 = vpop.f32.mrb[7].mxu0  ;;  %v2314_v38 = vpop.f32.mrb[7].mxu1 }
 0x2d0   :  { %v1849_v39 = vadd.f32 %v2290_v33, %v2218_v30 }
 0x2d2   :  { %v1889_v40 = vadd.f32 %v2312_v34, %v1849_v39 }
 0x2d4   :  { %v1894_v41 = vmax.f32 %v1889_v40, 0.0 }
 0x2d6   :  { %v1895_v42 = vpack.c.bf16 %v1894_v41, %v1894_v41 }
 0x2d8   :  { %2342 = vmatmul.mubr.bf16.vlgmr.msra.gmra.mrb[8].mxu0 %v1895_v42 }
 0x3ab   :  { %v2001_v44 = vpop.f32.mrb[8].mxu0 }
 0x3ac   :  { %v2002_v45 = vadd.f32 %v2263_v43, %v2001_v44  ;;  %v2343_v46 = vpop.f32.mrb[9].mxu0 }
 0x3ad   :  { %v2004_v47 = vpop.f32.mrb[10].mxu0 }
 0x3ae   :  { %v2007_v48 = vmax.f32 %v2002_v45, 0.0  ;;  %v2344_v49 = vpop.f32.mrb[11].mxu0 }
 0x3b0   :  { %2008 = vst [vmem:[#allocation11] sm:$0xff] %v2007_v48 }
 0x3b1   :  { %2826 = shalt.err (!%p2823_p2)
}
 0x3b2   :  { %s2827_s7 = scalar_lea.hbm %s3020_s8, 128 }
 0x3b3   :  { %p2828_p3 = scmp.ne.s32.totalorder %s3020_s8, %s2827_s7  ;;  %p2831_p4 = scmp.lt.u32.totalorder %s2827_s7, %s3020_s8 }
 0x3b5   :  { %p2833_p5 = pnand %p2831_p4, %p2828_p3 }
 0x3b7   :  { %2836 = shalt.err (!%p2833_p5)
}
 0x3b8   :  { %2018 = dma.vmem_to_hbm [thread:$0]  %s2016_s5, 128, %s3020_s8, [#allocation4]  }
 0x3b9   :  { %2843 = dma.done.wait [#allocation4], 128  }
 0x3ba   :  { %2844 = vsyncadd [#allocation4], 4294967168 }
 0x3bb   :  { %2022 = vsyncpa [#allocation3], 1 }
 0x3bc   :  { %2023 = vsyncpa [#allocation6], 1 }
 0x3bd   :  { %2024 = vsyncpa [#allocation9], 1 }
 0x3be   :  { %2025 = vsyncpa [#allocation4], 1 }

</bundles_post_ra>
